<compile_context>
chip_gen: v5e
topology: v5e:2x2
jax: 0.10.0
libtpu: 0.0.40
codegen_flags: <defaults>
</compile_context>

<pallas_src>
import functools
import math

import jax
import jax.numpy as jnp
from jax.experimental import pallas as pl
from jax.experimental.pallas import tpu as pltpu

LANES = 128


def _make_weighted_kernel(n):
    """refs: (w_ref[SMEM (n-1,) f32], x0..x{n-1} [VMEM (tr,128)], o_ref)."""

    def kernel(w_ref, *refs):
        x_refs = refs[:n]
        o_ref = refs[n]
        acc = x_refs[0][...].astype(jnp.float32)
        for i in range(1, n):  # n is small & static -> unrolled FMA chain
            acc = acc + x_refs[i][...].astype(jnp.float32) * w_ref[i - 1]
        o_ref[...] = acc.astype(o_ref.dtype)

    return kernel


def _make_unweighted_kernel(n):
    """refs: (x0..x{n-1} [VMEM (tr,128)], o_ref) -- no weights operand, no vmuls."""

    def kernel(*refs):
        x_refs = refs[:n]
        o_ref = refs[n]
        acc = x_refs[0][...].astype(jnp.float32)
        for i in range(1, n):
            acc = acc + x_refs[i][...].astype(jnp.float32)
        o_ref[...] = acc.astype(o_ref.dtype)

    return kernel


@functools.lru_cache(maxsize=1)
def _vmem_capacity_bytes():
    try:
        return int(pltpu.get_tpu_info().vmem_capacity_bytes)
    except Exception:
        return 64 << 20  # conservative default (v7x per-core VMEM)


def _pick_tiling(rows, n, itemsize, max_tile_rows=None):
    """Row-tile + vmem limit: as big as the per-generation VMEM budget allows."""
    phys = _vmem_capacity_bytes()
    two_cores = phys <= (64 << 20)  # v7x-class: 2 TensorCores, 64 MiB VMEM each
    # Per-row VMEM cost: double-buffered native-dtype in/out DMA buffers plus a
    # few f32 temporaries for the accumulate chain.
    row_cost = 2 * (n + 1) * LANES * itemsize + (n + 2) * LANES * 4
    budget = min((phys * 3) // 8, 48 << 20)  # ~24 MiB on v7x, ~48 MiB on v5e/v6e
    tr_cap = max(32, ((budget // row_cost) // 32) * 32)
    if max_tile_rows is not None:
        tr_cap = min(tr_cap, max(32, (max_tile_rows // 32) * 32))

    if rows <= tr_cap:
        # Single step unless a 2-TC chip has enough work to amortize the
        # ~0.35us/step pipeline overhead on a second step.
        steps = 2 if (two_cores and rows >= 4096) else 1
    else:
        steps = pl.cdiv(rows, tr_cap)
        if two_cores and steps % 2:
            steps += 1  # keep both TensorCores evenly loaded

    if steps == 1:
        tr = rows  # block == full array extent: no (8,128) divisibility needed
    else:
        tr = min(tr_cap, max(32, ((pl.cdiv(rows, steps) + 31) // 32) * 32))

    vmem_limit = int(min(phys - (8 << 20), max(32 << 20, row_cost * tr + (16 << 20))))
    return tr, vmem_limit


def pallas_sum(xs, weights=None, *, max_tile_rows=None):
    """xs: list of n same-shape/dtype arrays. weights: (n-1,) scales for x[1:] or None."""
    n = len(xs)
    if n == 1:
        return xs[0]
    shape = xs[0].shape
    dtype = xs[0].dtype
    total = math.prod(shape)
    itemsize = jnp.dtype(dtype).itemsize

    if weights is not None:
        weights = weights.astype(jnp.float32)

    def xla_sum(parts):
        # Plain elementwise path for tiny inputs / the <128-element tail.
        acc = parts[0].astype(jnp.float32)
        for i in range(1, n):
            term = parts[i].astype(jnp.float32)
            if weights is not None:
                term = term * weights[i - 1]
            acc = acc + term
        return acc.astype(dtype)

    aligned = (total // LANES) * LANES
    tail = total - aligned
    if aligned == 0:
        return xla_sum(xs)  # fewer than 128 elements: not worth a kernel launch

    rows = aligned // LANES
    if tail == 0:
        bulk = [x.reshape(rows, LANES) for x in xs]
        flats = None
    else:
        flats = [x.reshape(-1) for x in xs]
        bulk = [f[:aligned].reshape(rows, LANES) for f in flats]

    tr, vmem_limit = _pick_tiling(rows, n, itemsize, max_tile_rows)
    grid = (pl.cdiv(rows, tr),)  # cdiv grid: Pallas masks the final partial block
    block = (tr, LANES)
    idx = lambda i: (i, 0)
    x_specs = [pl.BlockSpec(block, idx) for _ in range(n)]
    out_spec = pl.BlockSpec(block, idx)

    cost = pl.CostEstimate(
        flops=2 * (n - 1) * aligned,
        transcendentals=0,
        bytes_accessed=(n + 1) * aligned * itemsize,
    )
    params = pltpu.CompilerParams(
        dimension_semantics=("parallel",),
        vmem_limit_bytes=vmem_limit,
    )

    if weights is not None:
        out2d = pl.pallas_call(
            _make_weighted_kernel(n),
            out_shape=jax.ShapeDtypeStruct((rows, LANES), dtype),
            grid_spec=pl.GridSpec(
                grid=grid,
                in_specs=[pl.BlockSpec(memory_space=pltpu.MemorySpace.SMEM)] + x_specs,
                out_specs=out_spec,
            ),
            compiler_params=params,
            cost_estimate=cost,
        )(weights, *bulk)
    else:
        out2d = pl.pallas_call(
            _make_unweighted_kernel(n),
            out_shape=jax.ShapeDtypeStruct((rows, LANES), dtype),
            grid_spec=pl.GridSpec(grid=grid, in_specs=x_specs, out_specs=out_spec),
            compiler_params=params,
            cost_estimate=cost,
        )(*bulk)

    out_flat = out2d.reshape(-1)
    if tail:
        tail_out = xla_sum([f[aligned:] for f in flats])
        out_flat = jnp.concatenate([out_flat, tail_out])
    return out_flat.reshape(shape)


class SumPallas:
    """Mirror of the PyTorch Sum(n, weight) module (forward pass)."""

    def __init__(self, n, weight=False):
        self.n = n
        self.weight = weight
        if weight:
            # nn.Parameter(-torch.arange(1.0, n) / 2) -- deterministic init
            self.w_param = -jnp.arange(1.0, float(n)) / 2.0

    def __call__(self, x):
        xs = list(x)
        if self.weight:
            w = jax.nn.sigmoid(self.w_param) * 2.0
            return pallas_sum(xs, w)
        return pallas_sum(xs, None)


if __name__ == "__main__":
    key = jax.random.PRNGKey(0)
    n = 3
    B, C, H, W = 2, 4, 16, 16  # NCHW

    keys = jax.random.split(key, n)
    xs = [jax.random.normal(k, (B, C, H, W), dtype=jnp.float32) for k in keys]
    w_ref = jax.nn.sigmoid(-jnp.arange(1.0, float(n)) / 2.0) * 2.0

    # Weighted variant (exercises the sigmoid-scaled weights)
    mod_w = SumPallas(n, weight=True)
    y_w = jax.block_until_ready(mod_w(xs))
    ref_w = xs[0] + xs[1] * w_ref[0] + xs[2] * w_ref[1]
    assert jnp.allclose(y_w, ref_w, atol=1e-5, rtol=1e-5)

    # Unweighted variant (specialized kernel: no weights operand, no vmuls)
    mod_u = SumPallas(n, weight=False)
    y_u = jax.block_until_ready(mod_u(xs))
    ref_u = xs[0] + xs[1] + xs[2]
    assert jnp.allclose(y_u, ref_u, atol=1e-5, rtol=1e-5)

    # Native bf16 path (no host upcast; f32 accumulate inside the kernel)
    xs_bf = [x.astype(jnp.bfloat16) for x in xs]
    y_bf = jax.block_until_ready(mod_w(xs_bf))
    ref_bf = (
        xs_bf[0].astype(jnp.float32)
        + xs_bf[1].astype(jnp.float32) * w_ref[0]
        + xs_bf[2].astype(jnp.float32) * w_ref[1]
    ).astype(jnp.bfloat16)
    assert y_bf.dtype == jnp.bfloat16
    assert jnp.allclose(
        y_bf.astype(jnp.float32), ref_bf.astype(jnp.float32), atol=2e-2, rtol=2e-2
    )

    # Tiny odd shape (105 elements < 128): pure-XLA fallback path
    keys2 = jax.random.split(jax.random.PRNGKey(1), n)
    xs_odd = [jax.random.normal(k, (1, 3, 7, 5), dtype=jnp.float32) for k in keys2]
    y_odd = jax.block_until_ready(mod_u(xs_odd))
    ref_odd = xs_odd[0] + xs_odd[1] + xs_odd[2]
    assert jnp.allclose(y_odd, ref_odd, atol=1e-5, rtol=1e-5)

    # Odd shape above 128 elements: 128-aligned bulk through the kernel + XLA tail
    keys3 = jax.random.split(jax.random.PRNGKey(2), n)
    xs_odd2 = [jax.random.normal(k, (1, 3, 13, 7), dtype=jnp.float32) for k in keys3]
    y_odd2 = jax.block_until_ready(mod_w(xs_odd2))
    ref_odd2 = xs_odd2[0] + xs_odd2[1] * w_ref[0] + xs_odd2[2] * w_ref[1]
    assert jnp.allclose(y_odd2, ref_odd2, atol=1e-5, rtol=1e-5)

    # Larger input: runs as a single (or even) step, sized by the VMEM budget
    keys4 = jax.random.split(jax.random.PRNGKey(3), n)
    xs_big = [jax.random.normal(k, (2, 64, 32, 32), dtype=jnp.float32) for k in keys4]
    y_big = jax.block_until_ready(mod_w(xs_big))
    ref_big = xs_big[0] + xs_big[1] * w_ref[0] + xs_big[2] * w_ref[1]
    assert jnp.allclose(y_big, ref_big, atol=1e-5, rtol=1e-5)

    # Force the multi-step cdiv-grid path (exercises tiling/masking on any chip)
    y_tiled = jax.block_until_ready(
        pallas_sum(xs_big, w_ref.astype(jnp.float32), max_tile_rows=128)
    )
    assert jnp.allclose(y_tiled, ref_big, atol=1e-5, rtol=1e-5)

    print("KERNEL_OK")
</pallas_src>

<mosaic_0001>
module attributes {stable_mosaic.version = 11 : i64} {
  func.func @kernel(%arg0: i32, %arg1: memref<2xf32, #tpu.memory_space<smem>>, %arg2: memref<16x128xf32, #tpu.memory_space<vmem>>, %arg3: memref<16x128xf32, #tpu.memory_space<vmem>>, %arg4: memref<16x128xf32, #tpu.memory_space<vmem>>, %arg5: memref<16x128xf32, #tpu.memory_space<vmem>>) attributes {dimension_semantics = [#tpu.dimension_semantics<parallel>], iteration_bounds = array<i64: 1>, scalar_prefetch = 0 : i64, scratch_operands = 0 : i64, tpu.core_type = #tpu.core_type<tc>, window_params = [{transform_indices = @transform_0, window_bounds = array<i64: 2>}, {transform_indices = @transform_1, window_bounds = array<i64: 16, 128>}, {transform_indices = @transform_2, window_bounds = array<i64: 16, 128>}, {transform_indices = @transform_3, window_bounds = array<i64: 16, 128>}, {transform_indices = @transform_4, window_bounds = array<i64: 16, 128>}]} {
    %c0 = arith.constant 0 : index
    %c0_0 = arith.constant 0 : index
    %0 = vector.load %arg2[%c0, %c0_0] : memref<16x128xf32, #tpu.memory_space<vmem>>, vector<16x128xf32>
    %c0_1 = arith.constant 0 : index
    %c0_2 = arith.constant 0 : index
    %1 = vector.load %arg3[%c0_1, %c0_2] : memref<16x128xf32, #tpu.memory_space<vmem>>, vector<16x128xf32>
    %c0_3 = arith.constant 0 : index
    %2 = memref.load %arg1[%c0_3] : memref<2xf32, #tpu.memory_space<smem>>
    %3 = vector.broadcast %2 : f32 to vector<16x128xf32>
    %4 = arith.mulf %1, %3 : vector<16x128xf32>
    %5 = arith.addf %0, %4 : vector<16x128xf32>
    %c0_4 = arith.constant 0 : index
    %c0_5 = arith.constant 0 : index
    %6 = vector.load %arg4[%c0_4, %c0_5] : memref<16x128xf32, #tpu.memory_space<vmem>>, vector<16x128xf32>
    %c1 = arith.constant 1 : index
    %7 = memref.load %arg1[%c1] : memref<2xf32, #tpu.memory_space<smem>>
    %8 = vector.broadcast %7 : f32 to vector<16x128xf32>
    %9 = arith.mulf %6, %8 : vector<16x128xf32>
    %10 = arith.addf %5, %9 : vector<16x128xf32>
    %c0_6 = arith.constant 0 : index
    %c0_7 = arith.constant 0 : index
    %11 = vector.load %arg5[%c0_6, %c0_7] : memref<16x128xf32, #tpu.memory_space<vmem>>, vector<16x128xf32>
    tpu.vector_store %arg5[%c0_6, %c0_7], %10 {strides = array<i32>} : memref<16x128xf32, #tpu.memory_space<vmem>>, vector<16x128xf32>,
    return
  }
  func.func @transform_0(%arg0: i32) -> i32 {
    %c0_i32 = arith.constant 0 : i32
    %c0_i32_0 = arith.constant 0 : i32
    return %c0_i32 : i32
  }
  func.func @transform_1(%arg0: i32) -> (i32, i32) {
    %c0_i32 = arith.constant 0 : i32
    %c0_i32_0 = arith.constant 0 : i32
    return %arg0, %c0_i32 : i32, i32
  }
  func.func @transform_2(%arg0: i32) -> (i32, i32) {
    %c0_i32 = arith.constant 0 : i32
    %c0_i32_0 = arith.constant 0 : i32
    return %arg0, %c0_i32 : i32, i32
  }
  func.func @transform_3(%arg0: i32) -> (i32, i32) {
    %c0_i32 = arith.constant 0 : i32
    %c0_i32_0 = arith.constant 0 : i32
    return %arg0, %c0_i32 : i32, i32
  }
  func.func @transform_4(%arg0: i32) -> (i32, i32) {
    %c0_i32 = arith.constant 0 : i32
    %c0_i32_0 = arith.constant 0 : i32
    return %arg0, %c0_i32 : i32, i32
  }
}

</mosaic_0001>

<bundles_post_ra>
// kernel: tpu_custom_call.1
= control target key start
LH: loop header
LB: loop body
LE: loop exit
PB: predicated region body
PF: predicated region fallthrough
CT: control target
= control target key end

     0   :  { %9 = vsyncpa [#allocation5], 0  ;;  %s302_s0 = inlined_call_operand.hbm [shape: f32[2], index: 0, kind: input, shape index: {}]   ;;  %s303_s1 = inlined_call_operand.hbm [shape: f32[16,128], index: 1, kind: input, shape index: {}]   ;;  %s304_s2 = inlined_call_operand.hbm [shape: f32[16,128], index: 2, kind: input, shape index: {}]   ;;  %s305_s3 = inlined_call_operand.hbm [shape: f32[16,128], index: 3, kind: input, shape index: {}]   ;;  %s306_s4 = inlined_call_operand.hbm [shape: f32[16,128], index: 4, kind: output, shape index: {}]  }
   0x1   :  { %10 = vsyncpa [#allocation3], 0 }
   0x2   :  { %11 = vsyncpa [#allocation8], 0 }
   0x3   :  { %12 = vsyncpa [#allocation4], 0  ;;  %s39_s17 = sshll.u32 %s304_s2, 4  ;;  %s243_s18 = smov [#allocation7]   ;;  %s40_s17 = int_to_ptr.hbm [resolvable:$true] %s39_s17 }
   0x4   :  { %s41_s19 = sshll.u32 %s243_s18, 4  ;;  %s18_s22 = sshll.u32 %s302_s0, 4  ;;  %s42_s19 = int_to_ptr.vmem [resolvable:$true] %s41_s19  ;;  %s19_s22 = int_to_ptr.hbm [resolvable:$true] %s18_s22 }
   0x5   :  { %s244_s23 = smov 128   ;;  %s245_s24 = smov 8  }
   0x6   :  { %47 = dma.hbm_to_vmem [thread:$0]  %s40_s17, 256, %s42_s19, [#allocation8], %s244_s23, %s244_s23, %s245_s24  }
   0x7   :  { %s246_s25 = smov [#allocation2]   ;;  %s26_s2 = sshll.u32 %s303_s1, 4  ;;  %s27_s2 = int_to_ptr.hbm [resolvable:$true] %s26_s2 }
   0x8   :  { %21 = dma.hbm_to_smem %s19_s22, 16, %s246_s25, [#allocation5]  }
   0x9   :  { %s247_s28 = smov [#allocation6]   ;;  %s52_s0 = sshll.u32 %s305_s3, 4  ;;  %s53_s0 = int_to_ptr.hbm [resolvable:$true] %s52_s0 }
   0xa   :  { %s28_s29 = sshll.u32 %s247_s28, 4  ;;  %s248_s6 = smov [#allocation9]   ;;  %s29_s29 = int_to_ptr.vmem [resolvable:$true] %s28_s29 }
   0xb   :  { %34 = dma.hbm_to_vmem [thread:$0]  %s27_s2, 256, %s29_s29, [#allocation3], %s244_s23, %s244_s23, %s245_s24  }
   0xc   :  { %s54_s7 = sshll.u32 %s248_s6, 4  ;;  %s55_s7 = int_to_ptr.vmem [resolvable:$true] %s54_s7 }
   0xd   :  { %60 = dma.hbm_to_vmem [thread:$0]  %s53_s0, 256, %s55_s7, [#allocation8], %s244_s23, %s244_s23, %s245_s24  }
   0xe   :  { %235 = dma.done.wait [#allocation5], 16  }
   0xf   :  { %236 = vsyncadd [#allocation5], 4294967280 }
  0x10   :  { %237 = dma.done.wait [#allocation3], 256  }
  0x11   :  { %238 = vsyncadd [#allocation3], 4294967040 }
  0x12   :  { %239 = dma.done.wait [#allocation8], 512  }
  0x13   :  { %240 = vsyncadd [#allocation8], 4294966784 }
  0x14   :  { %77 = sfence }
  0x15   :  { %s82_s1 = sld [smem:[#allocation2]]  ;;  %v80_v0 = vld [vmem:[#allocation7] sm:$0xff]  ;;  %v81_v1 = vld [vmem:[#allocation7 + $0x8] sm:$0xff]  ;;  %v88_v2 = vld [vmem:[#allocation9] sm:$0xff]  ;;  %s249_s8 = smov [#allocation10]  }
  0x16   :  { %s119_s3 = sld [smem:[#allocation2 + $0x1]]  ;;  %v89_v3 = vld [vmem:[#allocation9 + $0x8] sm:$0xff]  ;;  %v78_v4 = vld [vmem:[#allocation6] sm:$0xff]  ;;  %s102_s9 = sshll.u32 %s249_s8, 4  ;;  %s103_s9 = int_to_ptr.vmem [resolvable:$true] %s102_s9 }
  0x17   :  { %v79_v6 = vld [vmem:[#allocation6 + $0x8] sm:$0xff]  ;;  %s104_s12 = sshll.u32 %s306_s4, 4  ;;  %s105_s12 = int_to_ptr.hbm [resolvable:$true] %s104_s12 }
  0x1b   :  { %v83_v5 = vstv %s82_s1 }
  0x1c   :  { %v84_v7 = vmul.f32 %v83_v5, %v80_v0  ;;  %v91_v8 = vstv %s119_s3  ;;  %v85_v9 = vmul.f32 %v83_v5, %v81_v1 }
  0x1d   :  { %v92_v10 = vmul.f32 %v91_v8, %v88_v2  ;;  %v93_v11 = vmul.f32 %v91_v8, %v89_v3 }
  0x1e   :  { %v86_v12 = vadd.f32 %v84_v7, %v78_v4  ;;  %v87_v13 = vadd.f32 %v85_v9, %v79_v6 }
  0x20   :  { %v94_v14 = vadd.f32 %v92_v10, %v86_v12  ;;  %v95_v15 = vadd.f32 %v93_v11, %v87_v13 }
  0x22   :  { %96 = vst [vmem:[#allocation10] sm:$0xff] %v94_v14 }
  0x23   :  { %97 = vst [vmem:[#allocation10 + $0x8] sm:$0xff] %v95_v15 }
  0x24   :  { %110 = dma.vmem_to_hbm [thread:$0]  %s103_s9, 256, %s105_s12, [#allocation4], %s244_s23, %s244_s23, %s245_s24  }
  0x25   :  { %241 = dma.done.wait [#allocation4], 256  }
  0x26   :  { %242 = vsyncadd [#allocation4], 4294967040 }
  0x27   :  { %115 = vsyncpa [#allocation3], 1 }
  0x28   :  { %116 = vsyncpa [#allocation8], 1 }
  0x29   :  { %117 = vsyncpa [#allocation4], 1 }
  0x2a   :  { %118 = vsyncpa [#allocation5], 1 }

</bundles_post_ra>
